<compile_context>
chip_gen: v6e
topology: v6e:2x2x1
jax: 0.10.0
libtpu: 0.0.40
codegen_flags: <defaults>
</compile_context>

<pallas_src>
import jax
import jax.numpy as jnp
from jax.experimental import pallas as pl
from jax.experimental.pallas import tpu as pltpu


def _add_pos_kernel(x_ref, pos_ref, o_ref):
    # x_ref: (TB, F) batch-tile, pos_ref: (1, F) -> broadcasts over the TB rows.
    o_ref[...] = x_ref[...] + pos_ref[...]


def _choose_batch_tile(batch, bytes_per_row, target_tile_bytes, vmem_tile_budget_bytes):
    """Rows per grid step: ~target_tile_bytes per DMA'd tile, sublane-aligned,
    with (x-in + out) double-buffered tiles kept inside the VMEM tile budget."""
    tb = max(1, min(batch, target_tile_bytes // max(1, bytes_per_row)))
    # 2 arrays (x in + out) x 2 buffers each; pos is one small extra block.
    while tb > 1 and 4 * tb * bytes_per_row > vmem_tile_budget_bytes:
        tb = (tb + 1) // 2
    if tb < batch:
        # Keep the block's second-to-last dim a multiple of the sublane tiling (8),
        # or let it equal the full batch dim.
        tb = min(batch, max(8, (tb // 8) * 8))
    return tb


def positional_embedding(x, pos_embed, *, target_tile_bytes=4 * 1024 * 1024,
                         vmem_tile_budget_bytes=24 * 1024 * 1024):
    """x: (B, S, D); pos_embed: (1, S, D). Returns x + pos_embed (PyTorch semantics)."""
    B, S, D = x.shape
    assert pos_embed.shape == (1, S, D), (pos_embed.shape, (1, S, D))

    F = S * D
    x2 = x.reshape(B, F)
    p2 = pos_embed.astype(x.dtype).reshape(1, F)

    bytes_per_row = F * x2.dtype.itemsize
    tb = _choose_batch_tile(B, bytes_per_row, target_tile_bytes, vmem_tile_budget_bytes)
    grid = (pl.cdiv(B, tb),)

    grid_spec = pltpu.PrefetchScalarGridSpec(
        num_scalar_prefetch=0,
        grid=grid,
        in_specs=[
            # Batch tile of the input; last dim F equals the full flattened dim
            # (lane-dense, no masked partial stores).
            pl.BlockSpec((tb, F), lambda b: (b, 0)),
            # Positional embedding: same (1, F) block every grid step (broadcast over B).
            # TODO(synk): pipeline_mode=pl.Buffered(1) would drop its second buffer.
            pl.BlockSpec((1, F), lambda b: (0, 0)),
        ],
        out_specs=pl.BlockSpec((tb, F), lambda b: (b, 0)),
    )

    out2 = pl.pallas_call(
        _add_pos_kernel,
        out_shape=jax.ShapeDtypeStruct((B, F), x.dtype),
        grid_spec=grid_spec,
        # Output reuses x's HBM buffer (identical shape/dtype): no extra allocation.
        input_output_aliases={0: 0},
        compiler_params=pltpu.CompilerParams(
            dimension_semantics=("parallel",),   # v7x: shard grid steps across both TCs
            vmem_limit_bytes=48 * 1024 * 1024,   # explicit; < 64 MiB physical on v7x
        ),
    )(x2, p2)

    return out2.reshape(B, S, D)


if __name__ == "__main__":
    key = jax.random.PRNGKey(0)
    kx, kp, kx2 = jax.random.split(key, 3)

    # Module params: num_patches=8, embed_dim=32  ->  pos_embed: (1, 9, 32)
    num_patches, embed_dim, batch = 8, 32, 2
    seq = num_patches + 1  # +1 for classification token

    x = jax.random.normal(kx, (batch, seq, embed_dim), dtype=jnp.float32)
    # PyTorch init is zeros; use deterministic small values so the add is nontrivial.
    pos_embed = 0.02 * jax.random.normal(kp, (1, seq, embed_dim), dtype=jnp.float32)

    out = jax.block_until_ready(positional_embedding(x, pos_embed))
    ref = x + pos_embed
    assert out.shape == (batch, seq, embed_dim)
    assert out.dtype == x.dtype
    assert jnp.allclose(out, ref, atol=1e-6, rtol=1e-6)

    # Exercise the batch-tiled multi-step-grid path: a tiny target tile forces
    # TB=8 blocks over B=20 (grid=3 with a ragged, masked tail block).
    batch2 = 20
    x_big = jax.random.normal(kx2, (batch2, seq, embed_dim), dtype=jnp.float32)
    out_big = jax.block_until_ready(
        positional_embedding(x_big, pos_embed, target_tile_bytes=4096))
    assert jnp.allclose(out_big, x_big + pos_embed, atol=1e-6, rtol=1e-6)

    print("KERNEL_OK")
</pallas_src>

<mosaic_0001>
module attributes {stable_mosaic.version = 11 : i64} {
  func.func @_add_pos_kernel(%arg0: i32, %arg1: memref<2x288xf32, #tpu.memory_space<vmem>>, %arg2: memref<1x288xf32, #tpu.memory_space<vmem>>, %arg3: memref<2x288xf32, #tpu.memory_space<vmem>>) attributes {dimension_semantics = [#tpu.dimension_semantics<parallel>], iteration_bounds = array<i64: 1>, scalar_prefetch = 0 : i64, scratch_operands = 0 : i64, tpu.core_type = #tpu.core_type<tc>, window_params = [{transform_indices = @transform_0, window_bounds = array<i64: 2, 288>}, {pipeline_mode = #tpu.pipeline_mode<synchronous>, transform_indices = @transform_1, window_bounds = array<i64: 1, 288>}, {transform_indices = @transform_2, window_bounds = array<i64: 2, 288>}]} {
    %c0 = arith.constant 0 : index
    %c0_0 = arith.constant 0 : index
    %0 = vector.load %arg1[%c0, %c0_0] : memref<2x288xf32, #tpu.memory_space<vmem>>, vector<2x288xf32>
    %c0_1 = arith.constant 0 : index
    %c0_2 = arith.constant 0 : index
    %1 = vector.load %arg2[%c0_1, %c0_2] : memref<1x288xf32, #tpu.memory_space<vmem>>, vector<1x288xf32>
    %2 = vector.broadcast %1 : vector<1x288xf32> to vector<2x288xf32>
    %3 = arith.addf %0, %2 : vector<2x288xf32>
    %c0_3 = arith.constant 0 : index
    %c0_4 = arith.constant 0 : index
    %4 = vector.load %arg3[%c0_3, %c0_4] : memref<2x288xf32, #tpu.memory_space<vmem>>, vector<2x288xf32>
    tpu.vector_store %arg3[%c0_3, %c0_4], %3 {strides = array<i32>} : memref<2x288xf32, #tpu.memory_space<vmem>>, vector<2x288xf32>,
    return
  }
  func.func @transform_0(%arg0: i32) -> (i32, i32) {
    %c0_i32 = arith.constant 0 : i32
    %c0_i32_0 = arith.constant 0 : i32
    return %arg0, %c0_i32 : i32, i32
  }
  func.func @transform_1(%arg0: i32) -> (i32, i32) {
    %c0_i32 = arith.constant 0 : i32
    %c0_i32_0 = arith.constant 0 : i32
    %c0_i32_1 = arith.constant 0 : i32
    return %c0_i32, %c0_i32_0 : i32, i32
  }
  func.func @transform_2(%arg0: i32) -> (i32, i32) {
    %c0_i32 = arith.constant 0 : i32
    %c0_i32_0 = arith.constant 0 : i32
    return %arg0, %c0_i32 : i32, i32
  }
}

</mosaic_0001>

<bundles_post_ra>
// kernel: tpu_custom_call.1
= control target key start
LH: loop header
LB: loop body
LE: loop exit
PB: predicated region body
PF: predicated region fallthrough
CT: control target
= control target key end

     0   :  { %7 = vsyncpa [#allocation3], 0  ;;  %s152_s0 = inlined_call_operand.hbm [shape: f32[2,288], index: 0, kind: input, shape index: {}, may-alias: {0,2}]   ;;  %s153_s1 = inlined_call_operand.vmem [shape: f32[1,288], index: 1, kind: input, shape index: {}]   ;;  %s154_s2 = inlined_call_operand.hbm [shape: f32[2,288], index: 2, kind: output, shape index: {}, may-alias: {0,2}]  }
   0x1   :  { %8 = vsyncpa [#allocation4], 0  ;;  %s125_s9 = smov [#allocation2]  }
   0x2   :  { %s15_s10 = sshll.u32 %s125_s9, 4  ;;  %s16_s10 = int_to_ptr.vmem [resolvable:$true] %s15_s10 }
   0x3   :  { %s89_s11 = scalar_lea.vmem %s16_s10, 96  ;;  %p94_p1 = scmp.lt.s32.totalorder %s16_s10, %s16_s10 }
   0x4   :  { %p90_p0 = scmp.ne.s32.totalorder %s16_s10, %s89_s11  ;;  %p95_p2 = scmp.lt.s32.totalorder %s89_s11, %s89_s11 }
   0x6   :  { %p96_p3 = por %p95_p2, %p94_p1 }
   0x8   :  { %p97_p4 = pnand %p96_p3, %p90_p0 }
   0xa   :  { %100 = shalt.err (!%p97_p4)
}
   0xb   :  { %18 = dma.hbm_to_vmem [thread:$0]  %s152_s0, 96, %s16_s10, [#allocation3]  }
   0xc   :  { %121 = dma.done.wait [#allocation3], 96  }
   0xd   :  { %122 = vsyncadd [#allocation3], 4294967200  ;;  %v27_v0 = vlaneseq  ;;  %v126_v1 = vmov 1983009808   ;;  %v25_v9 = vld [vmem:[%s153_s1] sm:$0x7] }
   0xe   :  { %v41_v2 = vunpack.c.l.s4 %v126_v1  ;;  %vm57_vm0 = vcmask 1041408   ;;  %vm58_vm1 = vcmask 1043458   ;;  %vm60_vm3 = vcmask 259076   ;;  %v24_v16 = vld [vmem:[#allocation2] sm:$0x3f]  ;;  %s127_s0 = smov [#allocation5]  }
   0xf   :  { %v28_v3 = vshrl.u32 %v27_v0, 7  ;;  %vm59_vm2 = vmor %vm58_vm1, %vm57_vm0  ;;  %s69_s16 = sshll.u32 %s127_s0, 4  ;;  %s70_s16 = int_to_ptr.vmem [resolvable:$true] %s69_s16 }
  0x10   :  { %v42_v4 = vunpack.c.0.s8 %v41_v2  ;;  %vm61_vm4 = vmor %vm60_vm3, %vm59_vm2  ;;  %s101_s17 = scalar_lea.vmem %s70_s16, 96  ;;  %p106_p6 = scmp.lt.s32.totalorder %s70_s16, %s70_s16 }
  0x11   :  { %v29_v5 = vsub.s32 0, %v28_v3  ;;  %v33_v6 = vsub.s32 1, %v28_v3  ;;  %v37_v7 = vsub.s32 2, %v28_v3  ;;  %p102_p5 = scmp.ne.s32.totalorder %s70_s16, %s101_s17  ;;  %p107_p7 = scmp.lt.s32.totalorder %s101_s17, %s101_s17 }
  0x12   :  { %v45_v8 = vsub.s32 %v42_v4, %v28_v3 }
  0x13   :  { %v30_v10 = vrot.slane %v25_v9, %v29_v5  ;;  %v34_v11 = vrot.slane %v25_v9, %v33_v6  ;;  %v38_v12 = vrot.slane %v25_v9, %v37_v7  ;;  %p108_p8 = por %p107_p7, %p106_p6 }
  0x15   :  { %v39_v13 = vcombine.low %v30_v10, %v34_v11  ;;  %v53_v14 = vrot.slane %v38_v12, %v45_v8  ;;  %p109_p9 = pnand %p108_p8, %p102_p5 }
  0x17   :  { %v46_v15 = vrot.slane %v39_v13, %v45_v8 }
  0x19   :  { %v54_v17 = vcombine.low %v46_v15, %v53_v14 }
  0x1b   :  { %v56_v18 = vadd.f32 %v54_v17, %v24_v16 }
  0x1d   :  { %62 = vst.msk [vmem:[#allocation5] sm:$0x3f] %vm61_vm4, %v56_v18 }
  0x1e   :  { %112 = shalt.err (!%p109_p9)
}
  0x1f   :  { %72 = dma.vmem_to_hbm [thread:$0]  %s70_s16, 96, %s154_s2, [#allocation4]  }
  0x20   :  { %123 = dma.done.wait [#allocation4], 96  }
  0x21   :  { %124 = vsyncadd [#allocation4], 4294967200 }
  0x22   :  { %76 = vsyncpa [#allocation3], 1 }
  0x23   :  { %77 = vsyncpa [#allocation4], 1 }

</bundles_post_ra>
